<compile_context>
chip_gen: v6e
topology: v6e:2x2x1
jax: 0.10.0
libtpu: 0.0.40
codegen_flags: <defaults>
</compile_context>

<pallas_src>
import functools

import jax
import jax.numpy as jnp
import numpy as np
from jax import lax
from jax.experimental import pallas as pl
from jax.experimental.pallas import tpu as pltpu


LANE = 128            # vreg lane width: output-channel dims are padded to this
DEFAULT_TM = 256      # M tile for matmul / BN-apply grids (>=512 for prod shapes)
BN_EPS = 1e-5


def _round_up(x, m):
    return ((x + m - 1) // m) * m


# ---------------------------------------------------------------------------
# Kernel 1: tiled matmul (1x1 conv) + fused per-channel BN statistics
# ---------------------------------------------------------------------------
def _matmul_stats_kernel(a_ref, b_ref, o_ref, sum_ref, ssq_ref, acc_ref):
    i = pl.program_id(0)
    k = pl.program_id(1)
    nk = pl.num_programs(1)

    @pl.when(k == 0)
    def _init_acc():
        acc_ref[...] = jnp.zeros_like(acc_ref)

    acc_ref[...] += jnp.dot(a_ref[...], b_ref[...],
                            preferred_element_type=jnp.float32)

    @pl.when(jnp.logical_and(i == 0, k == 0))
    def _init_stats():
        sum_ref[...] = jnp.zeros_like(sum_ref)
        ssq_ref[...] = jnp.zeros_like(ssq_ref)

    @pl.when(k == nk - 1)
    def _finalize():
        c = acc_ref[...]
        o_ref[...] = c
        sum_ref[...] += jnp.sum(c, axis=0, keepdims=True)
        ssq_ref[...] += jnp.sum(c * c, axis=0, keepdims=True)


def pallas_matmul_stats(a, b, *, tm=DEFAULT_TM):
    """bf16 (M,K) @ (K,Np) -> f32 (M,Np) plus per-channel sum / sum-of-squares.

    Np (output channels) is a multiple of 128 so stores are lane-dense.
    """
    M, K = a.shape
    K2, Np = b.shape
    assert K == K2 and Np % LANE == 0
    tm = min(tm, M)
    assert M % tm == 0 and tm % 8 == 0
    tk = 512 if (K > 512 and K % 512 == 0) else K
    nm, nk = M // tm, K // tk

    out_shape = (jax.ShapeDtypeStruct((M, Np), jnp.float32),
                 jax.ShapeDtypeStruct((1, Np), jnp.float32),
                 jax.ShapeDtypeStruct((1, Np), jnp.float32))
    return pl.pallas_call(
        _matmul_stats_kernel,
        out_shape=out_shape,
        grid_spec=pltpu.PrefetchScalarGridSpec(
            num_scalar_prefetch=0,
            grid=(nm, nk),
            in_specs=[pl.BlockSpec((tm, tk), lambda i, k: (i, k)),
                      pl.BlockSpec((tk, Np), lambda i, k: (k, 0))],
            out_specs=[pl.BlockSpec((tm, Np), lambda i, k: (i, 0)),
                       pl.BlockSpec((1, Np), lambda i, k: (0, 0)),
                       pl.BlockSpec((1, Np), lambda i, k: (0, 0))],
            scratch_shapes=[pltpu.VMEM((tm, Np), jnp.float32)]),
        compiler_params=pltpu.CompilerParams(
            # BN stats accumulate across M and the accumulator across K, so
            # both axes must stay sequential.
            dimension_semantics=("arbitrary", "arbitrary"),
            vmem_limit_bytes=64 * 1024 * 1024),
    )(a, b)


# ---------------------------------------------------------------------------
# Kernel 2: 3x3 conv (padding=1, stride s) as 9 in-kernel tap matmuls
#           + fused per-channel BN statistics.  No im2col tensor in HBM.
# ---------------------------------------------------------------------------
def _conv3x3_stats_kernel(ph_ref, w_ref, o_ref, sum_ref, ssq_ref, acc_ref,
                          *, stride, ho, wo):
    n = pl.program_id(0)
    cin = ph_ref.shape[-1]

    acc_ref[...] = jnp.zeros_like(acc_ref)
    for kh in range(3):
        for kw in range(3):
            p = (kh % stride) * stride + (kw % stride)    # phase index
            r0 = kh // stride
            c0 = kw // stride
            a = ph_ref[p, 0, r0:r0 + ho, c0:c0 + wo, :]   # (ho, wo, cin) bf16
            # Collapse (ho, wo) -> rows.  Do the reshape in f32 (8-row sublane
            # tiling, wo % 8 == 0) so it stays tile-aligned, then cast back
            # to bf16 for the MXU.
            a2 = a.astype(jnp.float32).reshape(ho * wo, cin).astype(jnp.bfloat16)
            acc_ref[...] += jnp.dot(a2, w_ref[kh * 3 + kw],
                                    preferred_element_type=jnp.float32)

    c = acc_ref[...]
    o_ref[0] = c

    @pl.when(n == 0)
    def _init_stats():
        sum_ref[...] = jnp.zeros_like(sum_ref)
        ssq_ref[...] = jnp.zeros_like(ssq_ref)

    sum_ref[...] += jnp.sum(c, axis=0, keepdims=True)
    ssq_ref[...] += jnp.sum(c * c, axis=0, keepdims=True)


def pallas_conv3x3_stats(x_nhwc, w_taps, stride):
    """3x3 conv (padding=1) + fused BN stats.  x_nhwc: bf16 (N,H,W,C)."""
    N, H, W, C = x_nhwc.shape
    Np = w_taps.shape[-1]
    s = stride
    Ho = (H + 2 - 3) // s + 1
    Wo = (W + 2 - 3) // s + 1
    # TODO(synk): general (non multiple-of-8) output widths need a padded path.
    assert Wo % 8 == 0, "in-kernel (ho,wo)->rows reshape assumes Wo % 8 == 0"
    Hs = Ho + 2 // s
    Ws = Wo + 2 // s

    # Spatial zero-padding + phase (space-to-batch) decomposition so every
    # tap inside the kernel is a static, unstrided slice.  This is one
    # relayout of the activation, not a 9x im2col copy.
    hp = jnp.pad(x_nhwc, ((0, 0), (1, 1), (1, 1), (0, 0)))
    phases = []
    for pr in range(s):
        for pc in range(s):
            sl = hp[:, pr::s, pc::s, :][:, :Hs, :Ws, :]
            pad_h = Hs - sl.shape[1]
            pad_w = Ws - sl.shape[2]
            if pad_h or pad_w:
                sl = jnp.pad(sl, ((0, 0), (0, pad_h), (0, pad_w), (0, 0)))
            phases.append(sl)
    ph = jnp.stack(phases, axis=0)                  # (s*s, N, Hs, Ws, C)
    P2 = s * s

    kernel = functools.partial(_conv3x3_stats_kernel, stride=s, ho=Ho, wo=Wo)
    out_shape = (jax.ShapeDtypeStruct((N, Ho * Wo, Np), jnp.float32),
                 jax.ShapeDtypeStruct((1, Np), jnp.float32),
                 jax.ShapeDtypeStruct((1, Np), jnp.float32))
    c, ssum, sssq = pl.pallas_call(
        kernel,
        out_shape=out_shape,
        grid_spec=pltpu.PrefetchScalarGridSpec(
            num_scalar_prefetch=0,
            grid=(N,),
            in_specs=[pl.BlockSpec((P2, 1, Hs, Ws, C),
                                   lambda n: (0, n, 0, 0, 0)),
                      pl.BlockSpec((9, C, Np), lambda n: (0, 0, 0))],
            out_specs=[pl.BlockSpec((1, Ho * Wo, Np), lambda n: (n, 0, 0)),
                       pl.BlockSpec((1, Np), lambda n: (0, 0)),
                       pl.BlockSpec((1, Np), lambda n: (0, 0))],
            scratch_shapes=[pltpu.VMEM((Ho * Wo, Np), jnp.float32)]),
        compiler_params=pltpu.CompilerParams(
            dimension_semantics=("arbitrary",),
            vmem_limit_bytes=64 * 1024 * 1024),
    )(ph, w_taps)
    return c.reshape(N * Ho * Wo, Np), ssum, sssq, (Ho, Wo)


# ---------------------------------------------------------------------------
# Kernel 3: tiled BatchNorm apply (+ residual add + ReLU), using the fused
#           sum / sum-of-squares statistics from the conv kernels.
# ---------------------------------------------------------------------------
def _bn_apply_kernel(c_ref, sum_ref, ssq_ref, g_ref, b_ref, *rest,
                     inv_count, eps, relu, residual):
    if residual:
        r_ref, o_ref = rest
    else:
        (o_ref,) = rest
    c = c_ref[...]
    mean = sum_ref[...] * inv_count
    var = ssq_ref[...] * inv_count - mean * mean        # biased (training-mode)
    scale = g_ref[...] * lax.rsqrt(var + eps)
    y = (c - mean) * scale + b_ref[...]
    if residual:
        y = y + r_ref[...]
    if relu:
        y = jnp.maximum(y, 0.0)
    o_ref[...] = y.astype(o_ref.dtype)


def pallas_bn_apply(c, csum, cssq, gamma, beta, *, count, residual=None,
                    relu=True, out_dtype=jnp.float32, eps=BN_EPS,
                    tm=DEFAULT_TM):
    M, Np = c.shape
    tm = min(tm, M)
    assert M % tm == 0 and tm % 8 == 0
    nm = M // tm
    args = [c, csum, cssq, gamma, beta]
    in_specs = [pl.BlockSpec((tm, Np), lambda i: (i, 0)),
                pl.BlockSpec((1, Np), lambda i: (0, 0)),
                pl.BlockSpec((1, Np), lambda i: (0, 0)),
                pl.BlockSpec((1, Np), lambda i: (0, 0)),
                pl.BlockSpec((1, Np), lambda i: (0, 0))]
    if residual is not None:
        args.append(residual)
        in_specs.append(pl.BlockSpec((tm, Np), lambda i: (i, 0)))
    kernel = functools.partial(_bn_apply_kernel, inv_count=1.0 / count,
                               eps=eps, relu=relu,
                               residual=residual is not None)
    return pl.pallas_call(
        kernel,
        out_shape=jax.ShapeDtypeStruct((M, Np), out_dtype),
        grid_spec=pltpu.PrefetchScalarGridSpec(
            num_scalar_prefetch=0,
            grid=(nm,),
            in_specs=in_specs,
            out_specs=pl.BlockSpec((tm, Np), lambda i: (i, 0))),
        compiler_params=pltpu.CompilerParams(
            dimension_semantics=("parallel",),
            vmem_limit_bytes=64 * 1024 * 1024),
    )(*args)


# ---------------------------------------------------------------------------
# Weight / parameter plumbing (host-side layout glue, plain XLA ops)
# ---------------------------------------------------------------------------
def _w1x1_to_mat(w_oihw, np_out):
    cout, cin = w_oihw.shape[0], w_oihw.shape[1]
    w = w_oihw.reshape(cout, cin).T                      # (cin, cout)
    w = jnp.pad(w, ((0, 0), (0, np_out - cout)))
    return w.astype(jnp.bfloat16)


def _w3x3_to_taps(w_oihw, np_out):
    cout, cin = w_oihw.shape[0], w_oihw.shape[1]
    w = jnp.transpose(w_oihw, (2, 3, 1, 0)).reshape(9, cin, cout)
    w = jnp.pad(w, ((0, 0), (0, 0), (0, np_out - cout)))
    return w.astype(jnp.bfloat16)


def _pad_vec(v, np_out):
    c = v.shape[0]
    return jnp.pad(v, (0, np_out - c)).reshape(1, np_out).astype(jnp.float32)


def init_bottleneck(key, in_planes, planes, stride):
    expansion = 4
    keys = jax.random.split(key, 12)

    def conv_init(k, cout, cin, ksz):
        fan_in = cin * ksz * ksz
        bound = 1.0 / np.sqrt(fan_in)
        return jax.random.uniform(k, (cout, cin, ksz, ksz), jnp.float32,
                                  -bound, bound)

    p = dict(
        conv1_w=conv_init(keys[0], planes, in_planes, 1),
        bn1_g=1.0 + 0.1 * jax.random.normal(keys[1], (planes,), jnp.float32),
        bn1_b=0.1 * jax.random.normal(keys[2], (planes,), jnp.float32),
        conv2_w=conv_init(keys[3], planes, planes, 3),
        bn2_g=1.0 + 0.1 * jax.random.normal(keys[4], (planes,), jnp.float32),
        bn2_b=0.1 * jax.random.normal(keys[5], (planes,), jnp.float32),
        conv3_w=conv_init(keys[6], expansion * planes, planes, 1),
        bn3_g=1.0 + 0.1 * jax.random.normal(keys[7], (expansion * planes,),
                                            jnp.float32),
        bn3_b=0.1 * jax.random.normal(keys[8], (expansion * planes,),
                                      jnp.float32),
    )
    has_shortcut = (stride != 1) or (in_planes != expansion * planes)
    if has_shortcut:
        p["sc_w"] = conv_init(keys[9], expansion * planes, in_planes, 1)
        p["sc_g"] = 1.0 + 0.1 * jax.random.normal(keys[10],
                                                  (expansion * planes,),
                                                  jnp.float32)
        p["sc_b"] = 0.1 * jax.random.normal(keys[11], (expansion * planes,),
                                            jnp.float32)
    return p, has_shortcut


# ---------------------------------------------------------------------------
# Bottleneck forward (Pallas path)
# ---------------------------------------------------------------------------
def bottleneck_forward(params, x_nchw, stride, has_shortcut):
    # NCHW <-> NHWC transposes only at the module boundary (see TODO above).
    x = jnp.transpose(x_nchw, (0, 2, 3, 1)).astype(jnp.float32)       # NHWC
    N, H, W, Cin = x.shape
    planes = params["conv1_w"].shape[0]
    cout = params["conv3_w"].shape[0]                 # expansion * planes
    np_mid = _round_up(planes, LANE)
    np_out = _round_up(cout, LANE)

    x_bf = x.astype(jnp.bfloat16)

    # conv1 (1x1) -> bn1 -> relu
    m1 = N * H * W
    c1, s1, q1 = pallas_matmul_stats(x_bf.reshape(m1, Cin),
                                     _w1x1_to_mat(params["conv1_w"], np_mid))
    h1 = pallas_bn_apply(c1, s1, q1,
                         _pad_vec(params["bn1_g"], np_mid),
                         _pad_vec(params["bn1_b"], np_mid),
                         count=m1, relu=True, out_dtype=jnp.bfloat16)
    h1 = h1[:, :planes].reshape(N, H, W, planes)                      # bf16

    # conv2 (3x3, stride) -> bn2 -> relu
    c2, s2, q2, (Ho, Wo) = pallas_conv3x3_stats(
        h1, _w3x3_to_taps(params["conv2_w"], np_mid), stride)
    m2 = N * Ho * Wo
    h2 = pallas_bn_apply(c2, s2, q2,
                         _pad_vec(params["bn2_g"], np_mid),
                         _pad_vec(params["bn2_b"], np_mid),
                         count=m2, relu=True, out_dtype=jnp.bfloat16)
    h2 = h2[:, :planes]                                               # (m2, planes)

    # shortcut branch
    if has_shortcut:
        xs = x_bf[:, ::stride, ::stride, :].reshape(m2, Cin)
        cs, ss, qs = pallas_matmul_stats(xs, _w1x1_to_mat(params["sc_w"],
                                                          np_out))
        sc = pallas_bn_apply(cs, ss, qs,
                             _pad_vec(params["sc_g"], np_out),
                             _pad_vec(params["sc_b"], np_out),
                             count=m2, relu=False, out_dtype=jnp.float32)
    else:
        # identity shortcut (stride == 1, Cin == expansion*planes); pad the
        # channel dim with zeros so it lines up with the lane-padded output.
        sc = jnp.pad(x.reshape(m2, Cin), ((0, 0), (0, np_out - Cin)))

    # conv3 (1x1) -> bn3 -> (+ shortcut) -> relu; residual add and ReLU are
    # fused into the BN-apply epilogue.
    c3, s3, q3 = pallas_matmul_stats(h2, _w1x1_to_mat(params["conv3_w"],
                                                      np_out))
    out = pallas_bn_apply(c3, s3, q3,
                          _pad_vec(params["bn3_g"], np_out),
                          _pad_vec(params["bn3_b"], np_out),
                          count=m2, residual=sc, relu=True,
                          out_dtype=jnp.float32)
    out = out[:, :cout].reshape(N, Ho, Wo, cout)
    return jnp.transpose(out, (0, 3, 1, 2))                           # NCHW


# ---------------------------------------------------------------------------
# Pure-JAX reference (mirrors the kernels' bf16 conv-input quantization)
# ---------------------------------------------------------------------------
def _q(t):
    return t.astype(jnp.bfloat16)


def _ref_conv(x, w, stride, padding):
    return lax.conv_general_dilated(
        _q(x), _q(w), (stride, stride),
        [(padding, padding), (padding, padding)],
        dimension_numbers=("NCHW", "OIHW", "NCHW"),
        preferred_element_type=jnp.float32)


def _ref_bn(x, gamma, beta, eps=BN_EPS):
    mean = jnp.mean(x, axis=(0, 2, 3), keepdims=True)
    var = jnp.mean((x - mean) ** 2, axis=(0, 2, 3), keepdims=True)
    return ((x - mean) * lax.rsqrt(var + eps) * gamma[None, :, None, None]
            + beta[None, :, None, None])


def reference_forward(params, x, stride, has_shortcut):
    out = jax.nn.relu(_ref_bn(_ref_conv(x, params["conv1_w"], 1, 0),
                              params["bn1_g"], params["bn1_b"]))
    out = jax.nn.relu(_ref_bn(_ref_conv(out, params["conv2_w"], stride, 1),
                              params["bn2_g"], params["bn2_b"]))
    out = _ref_bn(_ref_conv(out, params["conv3_w"], 1, 0),
                  params["bn3_g"], params["bn3_b"])
    if has_shortcut:
        sc = _ref_bn(_ref_conv(x, params["sc_w"], stride, 0),
                     params["sc_g"], params["sc_b"])
    else:
        sc = x
    return jax.nn.relu(out + sc)


# ---------------------------------------------------------------------------
# main
# ---------------------------------------------------------------------------
if __name__ == "__main__":
    key = jax.random.PRNGKey(0)
    kx1, kx2, kp1, kp2 = jax.random.split(key, 4)

    # Case 1: downsampling Bottleneck with 1x1-conv shortcut
    #         (in_planes=4, planes=8, stride=2) -> output (2, 32, 8, 8)
    x1 = jax.random.normal(kx1, (2, 4, 16, 16), jnp.float32)
    params1, has_sc1 = init_bottleneck(kp1, in_planes=4, planes=8, stride=2)
    out1 = jax.block_until_ready(bottleneck_forward(params1, x1, 2, has_sc1))
    ref1 = reference_forward(params1, x1, 2, has_sc1)
    np.testing.assert_allclose(np.asarray(out1), np.asarray(ref1),
                               rtol=5e-3, atol=5e-3)
    assert out1.shape == (2, 32, 8, 8)

    # Case 2: identity-shortcut Bottleneck
    #         (in_planes=16, planes=4, stride=1) -> output (2, 16, 16, 16)
    x2 = jax.random.normal(kx2, (2, 16, 16, 16), jnp.float32)
    params2, has_sc2 = init_bottleneck(kp2, in_planes=16, planes=4, stride=1)
    out2 = jax.block_until_ready(bottleneck_forward(params2, x2, 1, has_sc2))
    ref2 = reference_forward(params2, x2, 1, has_sc2)
    np.testing.assert_allclose(np.asarray(out2), np.asarray(ref2),
                               rtol=5e-3, atol=5e-3)
    assert out2.shape == (2, 16, 16, 16)

    print("KERNEL_OK")
</pallas_src>

<mosaic_0001>
module attributes {stable_mosaic.version = 11 : i64} {
  func.func @_matmul_stats_kernel(%arg0: i32, %arg1: i32, %arg2: memref<256x4xbf16, #tpu.memory_space<vmem>>, %arg3: memref<4x128xbf16, #tpu.memory_space<vmem>>, %arg4: memref<256x128xf32, #tpu.memory_space<vmem>>, %arg5: memref<1x128xf32, #tpu.memory_space<vmem>>, %arg6: memref<1x128xf32, #tpu.memory_space<vmem>>, %arg7: memref<256x128xf32, #tpu.memory_space<vmem>>) attributes {dimension_semantics = [#tpu.dimension_semantics<arbitrary>, #tpu.dimension_semantics<arbitrary>], iteration_bounds = array<i64: 2, 1>, scalar_prefetch = 0 : i64, scratch_operands = 1 : i64, tpu.core_type = #tpu.core_type<tc>, window_params = [{transform_indices = @transform_0, window_bounds = array<i64: 256, 4>}, {transform_indices = @transform_1, window_bounds = array<i64: 4, 128>}, {transform_indices = @transform_2, window_bounds = array<i64: 256, 128>}, {pipeline_mode = #tpu.pipeline_mode<synchronous>, transform_indices = @transform_3, window_bounds = array<i64: 1, 128>}, {pipeline_mode = #tpu.pipeline_mode<synchronous>, transform_indices = @transform_4, window_bounds = array<i64: 1, 128>}]} {
    %c0_i32 = arith.constant 0 : i32
    %0 = arith.cmpi eq, %arg1, %c0_i32 : i32
    %1 = arith.extui %0 : i1 to i32
    %c0_i32_0 = arith.constant 0 : i32
    %2 = arith.cmpi ne, %1, %c0_i32_0 : i32
    scf.if %2 {
      %cst_13 = arith.constant 0.000000e+00 : f32
      %17 = vector.broadcast %cst_13 : f32 to vector<256x128xf32>
      %c0_14 = arith.constant 0 : index
      %c0_15 = arith.constant 0 : index
      %18 = vector.load %arg7[%c0_14, %c0_15] : memref<256x128xf32, #tpu.memory_space<vmem>>, vector<256x128xf32>
      tpu.vector_store %arg7[%c0_14, %c0_15], %17 {strides = array<i32>} : memref<256x128xf32, #tpu.memory_space<vmem>>, vector<256x128xf32>,
    } else {
    }
    %c0 = arith.constant 0 : index
    %c0_1 = arith.constant 0 : index
    %3 = vector.load %arg7[%c0, %c0_1] : memref<256x128xf32, #tpu.memory_space<vmem>>, vector<256x128xf32>
    %c0_2 = arith.constant 0 : index
    %c0_3 = arith.constant 0 : index
    %4 = vector.load %arg2[%c0_2, %c0_3] : memref<256x4xbf16, #tpu.memory_space<vmem>>, vector<256x4xbf16>
    %c0_4 = arith.constant 0 : index
    %c0_5 = arith.constant 0 : index
    %5 = vector.load %arg3[%c0_4, %c0_5] : memref<4x128xbf16, #tpu.memory_space<vmem>>, vector<4x128xbf16>
    %cst = arith.constant dense<0.000000e+00> : vector<256x128xf32>
    %6 = tpu.matmul %4, %5, %cst {dimension_numbers = #tpu.dot_dimension_numbers<[1], [0], [0], [1], [0, 0, 1, 1], [], []>} : vector<256x4xbf16>, vector<4x128xbf16>, vector<256x128xf32> -> vector<256x128xf32>
    %7 = arith.addf %3, %6 : vector<256x128xf32>
    %c0_6 = arith.constant 0 : index
    %c0_7 = arith.constant 0 : index
    %8 = vector.load %arg7[%c0_6, %c0_7] : memref<256x128xf32, #tpu.memory_space<vmem>>, vector<256x128xf32>
    tpu.vector_store %arg7[%c0_6, %c0_7], %7 {strides = array<i32>} : memref<256x128xf32, #tpu.memory_space<vmem>>, vector<256x128xf32>,
    %c0_i32_8 = arith.constant 0 : i32
    %9 = arith.cmpi eq, %arg0, %c0_i32_8 : i32
    %c0_i32_9 = arith.constant 0 : i32
    %10 = arith.cmpi eq, %arg1, %c0_i32_9 : i32
    %11 = arith.andi %9, %10 : i1
    %12 = arith.extui %11 : i1 to i32
    %c0_i32_10 = arith.constant 0 : i32
    %13 = arith.cmpi ne, %12, %c0_i32_10 : i32
    scf.if %13 {
      %cst_13 = arith.constant 0.000000e+00 : f32
      %17 = vector.broadcast %cst_13 : f32 to vector<1x128xf32>
      %c0_14 = arith.constant 0 : index
      %c0_15 = arith.constant 0 : index
      %18 = vector.load %arg5[%c0_14, %c0_15] : memref<1x128xf32, #tpu.memory_space<vmem>>, vector<1x128xf32>
      tpu.vector_store %arg5[%c0_14, %c0_15], %17 {strides = array<i32>} : memref<1x128xf32, #tpu.memory_space<vmem>>, vector<1x128xf32>,
      %cst_16 = arith.constant 0.000000e+00 : f32
      %19 = vector.broadcast %cst_16 : f32 to vector<1x128xf32>
      %c0_17 = arith.constant 0 : index
      %c0_18 = arith.constant 0 : index
      %20 = vector.load %arg6[%c0_17, %c0_18] : memref<1x128xf32, #tpu.memory_space<vmem>>, vector<1x128xf32>
      tpu.vector_store %arg6[%c0_17, %c0_18], %19 {strides = array<i32>} : memref<1x128xf32, #tpu.memory_space<vmem>>, vector<1x128xf32>,
    } else {
    }
    %c0_i32_11 = arith.constant 0 : i32
    %14 = arith.cmpi eq, %arg1, %c0_i32_11 : i32
    %15 = arith.extui %14 : i1 to i32
    %c0_i32_12 = arith.constant 0 : i32
    %16 = arith.cmpi ne, %15, %c0_i32_12 : i32
    scf.if %16 {
      %c0_13 = arith.constant 0 : index
      %c0_14 = arith.constant 0 : index
      %17 = vector.load %arg7[%c0_13, %c0_14] : memref<256x128xf32, #tpu.memory_space<vmem>>, vector<256x128xf32>
      %c0_15 = arith.constant 0 : index
      %c0_16 = arith.constant 0 : index
      %18 = vector.load %arg4[%c0_15, %c0_16] : memref<256x128xf32, #tpu.memory_space<vmem>>, vector<256x128xf32>
      tpu.vector_store %arg4[%c0_15, %c0_16], %17 {strides = array<i32>} : memref<256x128xf32, #tpu.memory_space<vmem>>, vector<256x128xf32>,
      %c0_17 = arith.constant 0 : index
      %c0_18 = arith.constant 0 : index
      %19 = vector.load %arg5[%c0_17, %c0_18] : memref<1x128xf32, #tpu.memory_space<vmem>>, vector<1x128xf32>
      %cst_19 = arith.constant dense<0.000000e+00> : vector<128xf32>
      %20 = vector.multi_reduction <add>, %17, %cst_19 [0] : vector<256x128xf32> to vector<128xf32>
      %21 = vector.shape_cast %20 : vector<128xf32> to vector<1x128xf32>
      %22 = arith.addf %19, %21 : vector<1x128xf32>
      %c0_20 = arith.constant 0 : index
      %c0_21 = arith.constant 0 : index
      %23 = vector.load %arg5[%c0_20, %c0_21] : memref<1x128xf32, #tpu.memory_space<vmem>>, vector<1x128xf32>
      tpu.vector_store %arg5[%c0_20, %c0_21], %22 {strides = array<i32>} : memref<1x128xf32, #tpu.memory_space<vmem>>, vector<1x128xf32>,
      %c0_22 = arith.constant 0 : index
      %c0_23 = arith.constant 0 : index
      %24 = vector.load %arg6[%c0_22, %c0_23] : memref<1x128xf32, #tpu.memory_space<vmem>>, vector<1x128xf32>
      %25 = arith.mulf %17, %17 : vector<256x128xf32>
      %cst_24 = arith.constant dense<0.000000e+00> : vector<128xf32>
      %26 = vector.multi_reduction <add>, %25, %cst_24 [0] : vector<256x128xf32> to vector<128xf32>
      %27 = vector.shape_cast %26 : vector<128xf32> to vector<1x128xf32>
      %28 = arith.addf %24, %27 : vector<1x128xf32>
      %c0_25 = arith.constant 0 : index
      %c0_26 = arith.constant 0 : index
      %29 = vector.load %arg6[%c0_25, %c0_26] : memref<1x128xf32, #tpu.memory_space<vmem>>, vector<1x128xf32>
      tpu.vector_store %arg6[%c0_25, %c0_26], %28 {strides = array<i32>} : memref<1x128xf32, #tpu.memory_space<vmem>>, vector<1x128xf32>,
    } else {
    }
    return
  }
  func.func @transform_0(%arg0: i32, %arg1: i32) -> (i32, i32) {
    %c0_i32 = arith.constant 0 : i32
    return %arg0, %arg1 : i32, i32
  }
  func.func @transform_1(%arg0: i32, %arg1: i32) -> (i32, i32) {
    %c0_i32 = arith.constant 0 : i32
    %c0_i32_0 = arith.constant 0 : i32
    return %arg1, %c0_i32 : i32, i32
  }
  func.func @transform_2(%arg0: i32, %arg1: i32) -> (i32, i32) {
    %c0_i32 = arith.constant 0 : i32
    %c0_i32_0 = arith.constant 0 : i32
    return %arg0, %c0_i32 : i32, i32
  }
  func.func @transform_3(%arg0: i32, %arg1: i32) -> (i32, i32) {
    %c0_i32 = arith.constant 0 : i32
    %c0_i32_0 = arith.constant 0 : i32
    %c0_i32_1 = arith.constant 0 : i32
    return %c0_i32, %c0_i32_0 : i32, i32
  }
  func.func @transform_4(%arg0: i32, %arg1: i32) -> (i32, i32) {
    %c0_i32 = arith.constant 0 : i32
    %c0_i32_0 = arith.constant 0 : i32
    %c0_i32_1 = arith.constant 0 : i32
    return %c0_i32, %c0_i32_0 : i32, i32
  }
}

</mosaic_0001>

<bundles_post_ra>
// kernel: tpu_custom_call.1
= control target key start
LH: loop header
LB: loop body
LE: loop exit
PB: predicated region body
PF: predicated region fallthrough
CT: control target
= control target key end

     0   :  { %10 = vsyncpa [#allocation4], 0  ;;  %s1765_s0 = inlined_call_operand.vmem [shape: bf16[512,4], index: 0, kind: input, shape index: {}]   ;;  %s1766_s1 = inlined_call_operand.vmem [shape: bf16[4,128], index: 1, kind: input, shape index: {}]   ;;  %s1767_s2 = inlined_call_operand.hbm [shape: f32[512,128], index: 2, kind: output, shape index: {0}]   ;;  %s1768_s3 = inlined_call_operand.hbm [shape: f32[1,128], index: 3, kind: output, shape index: {1}]   ;;  %s1769_s4 = inlined_call_operand.hbm [shape: f32[1,128], index: 4, kind: output, shape index: {2}]  }
   0x1   :  { %12 = vsyncpa [#allocation4 + $0x1], 0 }
   0x2   :  { %13 = vsyncpa [#allocation6], 0  ;;  %s1384_s15 = smov 0   ;;  %s1386_s16 = smov 0  }
   0x3   :  { %s1388_s17 = smov 0   ;;  %s1390_s18 = smov 0  }
   0x4   :  { %s1392_s19 = smov 0   ;;  %s1394_s20 = smov 0  }
   0x5 LB: > { %s1026_s21 = sadd.s32 4294967295, %s1351_s20   ;;  %s1027_s22 = sadd.s32 4294967294, %s1351_s20   ;;  %s1351_s20 = sphi %s1394_s20, %s19_s20   ;;  %s1347_s19 = sphi %s1392_s19, %s1777_s19   ;;  %s1343_s18 = sphi %s1390_s18, %s1776_s18   ;;  %s1339_s17 = sphi %s1388_s17, %s1775_s17   ;;  %s1335_s16 = sphi %s1386_s16, %s1774_s16   ;;  %s1331_s15 = sphi %s1384_s15, %s1773_s15  }
   0x6   : > { %s31_s23 = sadd.s32 1, %s1347_s19  ;;  %s92_s24 = sadd.s32 1, %s1339_s17 }
   0x7   : > { %p33_p0 = scmp.ge.s32.totalorder %s31_s23, 2  ;;  %p102_p1 = scmp.ne.s32.totalorder %s1339_s17, %s1335_s16 }
   0x8   : > { %p1420_p2 = scmp.eq.s32.totalorder %s1026_s21, 1  ;;  %p108_p3 = scmp.ne.s32.totalorder %s1335_s16, %s1331_s15 }
   0x9   : > { %s1779_s23 = smov (%p33_p0, %s31_s23), 0  ;;  %p109_p5 = scmp.eq.s32.totalorder %s1027_s22, 1 }
   0xa   : > { %p1430_p4 = por %p1420_p2, %p102_p1  ;;  %s89_s27 = ssub.s32 %s1347_s19, %s1779_s23 }
   0xb   : > { %p1031_p6 = scmp.ge.s32.totalorder %s1351_s20, 1  ;;  %p90_p7 = scmp.eq.s32.totalorder %s89_s27, 0 }
   0xc   : > { %p1437_p8 = por %p109_p5, %p108_p3  ;;  %p188_p9 = scmp.lt.s32.totalorder %s1351_s20, 3 }
   0xd   : > { %s1443_s29 = scalar_select %p90_p7, %s1339_s17, %s92_s24  }
   0xe   : > { %p189_p10 = pnand %p1031_p6, %p188_p9 }
   0xf   : > { %s214_s30 = sand.u32 (!%p189_p10), 1, %s1335_s16   ;;  %s1033_s7 = sshll.u32 (!%p189_p10), %s1343_s18, 5 }
  0x10   : > { %192 = sbr.rel (%p189_p10) target bundleno = 360 (0x168), region = 28  ;;  %s1452_s8 = sshll.u32 (!%p189_p10), %s214_s30, 8 }
  0x11   : > { %p222_p11 = scmp.lt.s32.totalorder (!%p189_p10), %s1033_s7, 63  ;;  %p695_p12 = scmp.eq.s32.totalorder (!%p189_p10), %s1343_s18, 0 }
  0x12   : > { %s1493_s13 = scalar_lea.vmem (!%p189_p10), [#allocation3], %s1452_s8 }
  0x15   : > { %v336_v0 = vld [vmem:[%s1766_s1] sm:$0x3]  ;;  %vm466_vm0 = vcmask 1041408   ;;  %s1781_s7 = smov (!%p222_p11, %s1033_s7), 63  ;;  %vm417_vm1 = vcmask 31744   ;;  %v1353_v50 = vmov (%p695_p12), 0.0  }
  0x16   : > { %1132 = vmatprep.subr.msk.bf16.mxu0 %vm466_vm0, %v336_v0  ;;  %1133 = vmatprep.subr.msk.bf16.mxu1 %vm466_vm0, %v336_v0  ;;  %v468_v1 = vsel %vm466_vm0, %v336_v0, 0  ;;  %s1034_s9 = sshll.u32 %s1781_s7, 2  ;;  %700 = vst [vmem:[#allocation5] sm:$0x1] (%p695_p12), %v1353_v50  ;;  %701 = vst [vmem:[#allocation7] sm:$0x1] (%p695_p12), %v1353_v50 }
  0x17   : > { %1097 = vmatpush3.bf16.msra.mxu0 %v468_v1  ;;  %1131 = vmatpush3.bf16.msra.mxu1 %v468_v1  ;;  %s1457_s12 = scalar_lea.vmem %s1765_s0, %s1034_s9 }
  0x18   : > { %v1207_v2 = vld [vmem:[%s1457_s12] sm:$0xff]   ;;  %v1209_v4 = vld [vmem:[%s1457_s12 + $0x8] sm:$0xff]   ;;  %v1211_v6 = vld [vmem:[%s1457_s12 + $0x10] sm:$0xff]  }
  0x19   : > { %v1208_v3 = vld [vmem:[%s1457_s12 + $0x40] sm:$0xff]   ;;  %1098 = vmatprep.mubr.msk.bf16.mxu0 %vm417_vm1, %v1207_v2  ;;  %v1210_v5 = vld [vmem:[%s1457_s12 + $0x48] sm:$0xff]   ;;  %v1212_v7 = vld [vmem:[%s1457_s12 + $0x50] sm:$0xff]  }
  0x1a   : > { %1114 = vmatprep.mubr.msk.bf16.mxu1 %vm417_vm1, %v1208_v3  ;;  %1099 = vmatmul.mubr.msk.bf16.vlgmr.msra.gmra.mxu0 %vm417_vm1, %v1209_v4  ;;  %v1213_v8 = vld [vmem:[%s1457_s12 + $0x18] sm:$0xff]   ;;  %v1215_v10 = vld [vmem:[%s1457_s12 + $0x20] sm:$0xff]   ;;  %v1217_v12 = vld [vmem:[%s1457_s12 + $0x28] sm:$0xff]  }
  0x1b   : > { %1115 = vmatmul.mubr.msk.bf16.vlgmr.msra.gmra.mxu1 %vm417_vm1, %v1210_v5  ;;  %1102 = vmatprep.mubr.msk.bf16.mxu0 %vm417_vm1, %v1211_v6  ;;  %v1214_v9 = vld [vmem:[%s1457_s12 + $0x58] sm:$0xff]   ;;  %v1216_v11 = vld [vmem:[%s1457_s12 + $0x60] sm:$0xff]   ;;  %v1218_v13 = vld [vmem:[%s1457_s12 + $0x68] sm:$0xff]  }
  0x1c   : > { %1118 = vmatprep.mubr.msk.bf16.mxu1 %vm417_vm1, %v1212_v7  ;;  %v1219_v14 = vld [vmem:[%s1457_s12 + $0x30] sm:$0xff]   ;;  %v1221_v16 = vld [vmem:[%s1457_s12 + $0x38] sm:$0xff]  }
  0x1d   : > { %v1220_v15 = vld [vmem:[%s1457_s12 + $0x70] sm:$0xff]   ;;  %v1222_v17 = vld [vmem:[%s1457_s12 + $0x78] sm:$0xff]  }
  0x22   : > { %1103 = vmatmul.mubr.msk.bf16.gmra.mxu0 %vm417_vm1, %v1213_v8 }
  0x23   : > { %1119 = vmatmul.mubr.msk.bf16.gmra.mxu1 %vm417_vm1, %v1214_v9  ;;  %1106 = vmatprep.mubr.msk.bf16.mxu0 %vm417_vm1, %v1215_v10 }
  0x24   : > { %1122 = vmatprep.mubr.msk.bf16.mxu1 %vm417_vm1, %v1216_v11 }
  0x2a   : > { %1107 = vmatmul.mubr.msk.bf16.gmra.mxu0 %vm417_vm1, %v1217_v12 }
  0x2b   : > { %1123 = vmatmul.mubr.msk.bf16.gmra.mxu1 %vm417_vm1, %v1218_v13  ;;  %1110 = vmatprep.mubr.msk.bf16.mxu0 %vm417_vm1, %v1219_v14 }
  0x2c   : > { %1126 = vmatprep.mubr.msk.bf16.mxu1 %vm417_vm1, %v1220_v15 }
  0x32   : > { %1111 = vmatmul.mubr.msk.bf16.gmra.mxu0 %vm417_vm1, %v1221_v16 }
  0x33   : > { %1127 = vmatmul.mubr.msk.bf16.gmra.mxu1 %vm417_vm1, %v1222_v17 }
  0xda   : > { %v1100_v18 = vpop.f32.mrf.mxu0 }
  0xdb   : > { %v1116_v19 = vpop.f32.mrf.mxu1  ;;  %665 = vst [vmem:[#allocation2 + $0xd8] sm:$0xff] %v1100_v18 }
  0xdc   : > { %v504_v20 = vpop.f32.mrf.mxu0  ;;  %681 = vst [vmem:[#allocation2 + $0x40] sm:$0xff] %v1116_v19 }
  0xdd   : > { %v568_v21 = vpop.f32.mrf.mxu1  ;;  %663 = vst [vmem:[#allocation2 + $0xb0] sm:$0xff] %v504_v20 }
  0xde   : > { %v1101_v22 = vpop.f32.mrf.mxu0  ;;  %679 = vst [vmem:[#allocation2 + $0x38] sm:$0xff] %v568_v21 }
  0xdf   : > { %v1117_v23 = vpop.f32.mrf.mxu1  ;;  %666 = vst [vmem:[#allocation2 + $0x18] sm:$0xff] %v1101_v22 }
  0xe0   : > { %v507_v24 = vpop.f32.mrf.mxu0  ;;  %682 = vst [vmem:[#allocation2 + $0xc8] sm:$0xff] %v1117_v23 }
  0xe1   : > { %v571_v25 = vpop.f32.mrf.mxu1  ;;  %664 = vst [vmem:[#allocation2] sm:$0xff] %v507_v24 }
  0xe2   : > { %v1104_v26 = vpop.f32.mrf.mxu0  ;;  %680 = vst [vmem:[#allocation2 + $0x58] sm:$0xff] %v571_v25 }
  0xe3   : > { %v1120_v27 = vpop.f32.mrf.mxu1  ;;  %669 = vst [vmem:[#allocation2 + $0x30] sm:$0xff] %v1104_v26 }
  0xe4   : > { %v520_v28 = vpop.f32.mrf.mxu0  ;;  %685 = vst [vmem:[#allocation2 + $0x70] sm:$0xff] %v1120_v27 }
  0xe5   : > { %v584_v29 = vpop.f32.mrf.mxu1  ;;  %667 = vst [vmem:[#allocation2 + $0x50] sm:$0xff] %v520_v28 }
  0xe6   : > { %v1105_v30 = vpop.f32.mrf.mxu0  ;;  %683 = vst [vmem:[#allocation2 + $0xe0] sm:$0xff] %v584_v29 }
  0xe7   : > { %v1121_v31 = vpop.f32.mrf.mxu1  ;;  %670 = vst [vmem:[#allocation2 + $0x48] sm:$0xff] %v1105_v30 }
  0xe8   : > { %v523_v32 = vpop.f32.mrf.mxu0  ;;  %686 = vst [vmem:[#allocation2 + $0xc0] sm:$0xff] %v1121_v31 }
  0xe9   : > { %v587_v33 = vpop.f32.mrf.mxu1  ;;  %668 = vst [vmem:[#allocation2 + $0x68] sm:$0xff] %v523_v32 }
  0xea   : > { %v1108_v34 = vpop.f32.mrf.mxu0  ;;  %684 = vst [vmem:[#allocation2 + $0x90] sm:$0xff] %v587_v33 }
  0xeb   : > { %v1124_v35 = vpop.f32.mrf.mxu1  ;;  %673 = vst [vmem:[#allocation2 + $0xe8] sm:$0xff] %v1108_v34 }
  0xec   : > { %v536_v36 = vpop.f32.mrf.mxu0  ;;  %689 = vst [vmem:[#allocation2 + $0x10] sm:$0xff] %v1124_v35 }
  0xed   : > { %v600_v37 = vpop.f32.mrf.mxu1  ;;  %671 = vst [vmem:[#allocation2 + $0x80] sm:$0xff] %v536_v36 }
  0xee   : > { %v1109_v38 = vpop.f32.mrf.mxu0  ;;  %687 = vst [vmem:[#allocation2 + $0xa8] sm:$0xff] %v600_v37 }
  0xef   : > { %v1125_v39 = vpop.f32.mrf.mxu1  ;;  %674 = vst [vmem:[#allocation2 + $0xb8] sm:$0xff] %v1109_v38 }
  0xf0   : > { %v539_v40 = vpop.f32.mrf.mxu0  ;;  %690 = vst [vmem:[#allocation2 + $0x28] sm:$0xff] %v1125_v39 }
  0xf1   : > { %v603_v41 = vpop.f32.mrf.mxu1  ;;  %672 = vst [vmem:[#allocation2 + $0x88] sm:$0xff] %v539_v40 }
  0xf2   : > { %v1112_v42 = vpop.f32.mrf.mxu0  ;;  %688 = vst [vmem:[#allocation2 + $0xd0] sm:$0xff] %v603_v41 }
  0xf3   : > { %v1128_v43 = vpop.f32.mrf.mxu1  ;;  %677 = vst [vmem:[#allocation2 + $0x8] sm:$0xff] %v1112_v42 }
  0xf4   : > { %v552_v44 = vpop.f32.mrf.mxu0  ;;  %693 = vst [vmem:[#allocation2 + $0x20] sm:$0xff] %v1128_v43 }
  0xf5   : > { %v616_v45 = vpop.f32.mrf.mxu1  ;;  %675 = vst [vmem:[#allocation2 + $0x60] sm:$0xff] %v552_v44 }
  0xf6   : > { %v1113_v46 = vpop.f32.mrf.mxu0  ;;  %691 = vst [vmem:[#allocation2 + $0xa0] sm:$0xff] %v616_v45  ;;  %699 = sbr.rel (!%p695_p12) target bundleno = 251 (0xfb), region = 36 }
  0xf7   : > { %v1129_v47 = vpop.f32.mrf.mxu1  ;;  %678 = vst [vmem:[#allocation2 + $0x78] sm:$0xff] %v1113_v46 }
  0xf8   : > { %v555_v48 = vpop.f32.mrf.mxu0  ;;  %694 = vst [vmem:[#allocation2 + $0x98] sm:$0xff] %v1129_v47 }
  0xf9   : > { %v619_v49 = vpop.f32.mrf.mxu1  ;;  %676 = vst [vmem:[#allocation2 + $0xf0] sm:$0xff] %v555_v48 }
  0xfa   : > { %692 = vst [vmem:[#allocation2 + $0xf8] sm:$0xff] %v619_v49 }
  0xfb PF: > { %v705_v51 = vld [vmem:[#allocation2 + $0xb0] sm:$0xff]  ;;  %v706_v52 = vld [vmem:[#allocation2] sm:$0xff]  ;;  %v707_v53 = vld [vmem:[#allocation2 + $0xd8] sm:$0xff]  ;;  %s1078_s14 = sshll.u32 %s1343_s18, 12  ;;  %s895_s21 = sshll.u32 %s1493_s13, 4  ;;  %s1593_s21 = int_to_ptr.vmem [resolvable:$true] %s895_s21 }
  0xfc   : > { %v708_v54 = vld [vmem:[#allocation2 + $0x18] sm:$0xff]  ;;  %v709_v55 = vld [vmem:[#allocation2 + $0x50] sm:$0xff]  ;;  %v1497_v56 = vld [vmem:[#allocation2 + $0x68] sm:$0xff]  ;;  %v770_v57 = vadd.f32 %v706_v52, %v705_v51  ;;  %737 = vst [vmem:[%s1493_s13] sm:$0xff] %v705_v51  ;;  %v810_v58 = vmul.f32 %v705_v51, %v705_v51  ;;  %v811_v59 = vmul.f32 %v706_v52, %v706_v52  ;;  %v812_v63 = vmul.f32 %v707_v53, %v707_v53  ;;  %s1591_s24 = scalar_lea.hbm %s1767_s2, %s1078_s14  ;;  %s1629_s27 = scalar_lea.sflag [#allocation4], %s214_s30 }
  0xfd   : > { %738 = vst [vmem:[%s1493_s13 + $0x8] sm:$0xff] %v706_v52  ;;  %739 = vst [vmem:[%s1493_s13 + $0x10] sm:$0xff] %v707_v53  ;;  %v1502_v60 = vld [vmem:[#allocation2 + $0x30] sm:$0xff]  ;;  %v1504_v61 = vld [vmem:[#allocation2 + $0x48] sm:$0xff]  ;;  %v813_v7 = vmul.f32 %v708_v54, %v708_v54  ;;  %v814_v16 = vmul.f32 %v709_v55, %v709_v55  ;;  %v815_v25 = vmul.f32 %v1497_v56, %v1497_v56  ;;  %s1223_s5 = scalar_lea.vmem %s1593_s21, 4096  ;;  %s1354_s6 = smov [#allocation3]  }
  0xfe   : > { %v1506_v62 = vld [vmem:[#allocation2 + $0x80] sm:$0xff]  ;;  %740 = vst [vmem:[%s1493_s13 + $0x18] sm:$0xff] %v708_v54  ;;  %741 = vst [vmem:[%s1493_s13 + $0x20] sm:$0xff] %v709_v55  ;;  %v1512_v0 = vld [vmem:[#allocation2 + $0x88] sm:$0xff]  ;;  %v771_v3 = vadd.f32 %v770_v57, %v707_v53  ;;  %v842_v8 = vadd.f32 %v811_v59, %v810_v58  ;;  %v816_v33 = vmul.f32 %v1502_v60, %v1502_v60  ;;  %p1224_p13 = scmp.ne.s32.totalorder %s1593_s21, %s1223_s5  ;;  %s1227_s7 = sshll.u32 %s1354_s6, 4  ;;  %s1228_s7 = int_to_ptr.vmem [resolvable:$false] %s1227_s7 }
  0xff   : > { %742 = vst [vmem:[%s1493_s13 + $0x28] sm:$0xff] %v1497_v56  ;;  %v1514_v1 = vld [vmem:[#allocation2 + $0xe8] sm:$0xff]  ;;  %v1516_v2 = vld [vmem:[#allocation2 + $0xb8] sm:$0xff]  ;;  %743 = vst [vmem:[%s1493_s13 + $0x30] sm:$0xff] %v1502_v60  ;;  %v817_v36 = vmul.f32 %v1504_v61, %v1504_v61  ;;  %s1229_s8 = scalar_lea.vmem %s1228_s7, 8192  ;;  %p1230_p3 = scmp.lt.s32.totalorder %s1593_s21, %s1228_s7 }
 0x100   : > { %744 = vst [vmem:[%s1493_s13 + $0x38] sm:$0xff] %v1504_v61  ;;  %745 = vst [vmem:[%s1493_s13 + $0x40] sm:$0xff] %v1506_v62  ;;  %v1524_v4 = vld [vmem:[#allocation2 + $0x60] sm:$0xff]  ;;  %v1526_v5 = vld [vmem:[#allocation2 + $0xf0] sm:$0xff]  ;;  %v772_v12 = vadd.f32 %v771_v3, %v708_v54  ;;  %v843_v17 = vadd.f32 %v842_v8, %v812_v63  ;;  %p1225_p0 = pnand %p1224_p13, %p1430_p4  ;;  %p1231_p5 = scmp.lt.s32.totalorder %s1229_s8, %s1223_s5 }
 0x101   : > { %v1528_v6 = vld [vmem:[#allocation2 + $0x8] sm:$0xff]  ;;  %746 = vst [vmem:[%s1493_s13 + $0x48] sm:$0xff] %v1512_v0  ;;  %747 = vst [vmem:[%s1493_s13 + $0x50] sm:$0xff] %v1514_v1  ;;  %v1536_v9 = vld [vmem:[#allocation2 + $0x78] sm:$0xff] }
 0x102   : > { %748 = vst [vmem:[%s1493_s13 + $0x58] sm:$0xff] %v1516_v2  ;;  %v1538_v10 = vld [vmem:[#allocation2 + $0x38] sm:$0xff]  ;;  %749 = vst [vmem:[%s1493_s13 + $0x60] sm:$0xff] %v1524_v4  ;;  %v1550_v13 = vld [vmem:[#allocation2 + $0x40] sm:$0xff]  ;;  %v773_v21 = vadd.f32 %v772_v12, %v709_v55  ;;  %v844_v26 = vadd.f32 %v843_v17, %v813_v7  ;;  %p1226_p1 = pneg %p1225_p0  ;;  %p1232_p6 = por %p1231_p5, %p1230_p3 }
 0x103   : > { %v1540_v11 = vld [vmem:[#allocation2 + $0x58] sm:$0xff]  ;;  %750 = vst [vmem:[%s1493_s13 + $0x68] sm:$0xff] %v1526_v5  ;;  %751 = vst [vmem:[%s1493_s13 + $0x70] sm:$0xff] %v1528_v6  ;;  %v1552_v14 = vld [vmem:[#allocation2 + $0xc8] sm:$0xff] }
 0x104   : > { %v1554_v15 = vld [vmem:[#allocation2 + $0xe0] sm:$0xff]  ;;  %752 = vst [vmem:[%s1493_s13 + $0x78] sm:$0xff] %v1536_v9  ;;  %753 = vst [vmem:[%s1493_s13 + $0x80] sm:$0xff] %v1538_v10  ;;  %v1562_v18 = vld [vmem:[#allocation2 + $0x90] sm:$0xff]  ;;  %v774_v30 = vadd.f32 %v773_v21, %v1497_v56  ;;  %v845_v34 = vadd.f32 %v844_v26, %v814_v16  ;;  %p1233_p7 = pnand %p1232_p6, %p1226_p1 }
 0x105   : > { %754 = vst [vmem:[%s1493_s13 + $0x88] sm:$0xff] %v1540_v11  ;;  %v1564_v19 = vld [vmem:[#allocation2 + $0x70] sm:$0xff]  ;;  %v1566_v20 = vld [vmem:[#allocation2 + $0xc0] sm:$0xff]  ;;  %755 = vst [vmem:[%s1493_s13 + $0x90] sm:$0xff] %v1550_v13 }
 0x106   : > { %756 = vst [vmem:[%s1493_s13 + $0x98] sm:$0xff] %v1552_v14  ;;  %757 = vst [vmem:[%s1493_s13 + $0xa0] sm:$0xff] %v1554_v15  ;;  %v1574_v22 = vld [vmem:[#allocation2 + $0xa8] sm:$0xff]  ;;  %v1576_v23 = vld [vmem:[#allocation2 + $0xd0] sm:$0xff]  ;;  %v775_v35 = vadd.f32 %v774_v30, %v1502_v60  ;;  %v846_v37 = vadd.f32 %v845_v34, %v815_v25 }
 0x107   : > { %v1578_v24 = vld [vmem:[#allocation2 + $0x10] sm:$0xff]  ;;  %758 = vst [vmem:[%s1493_s13 + $0xa8] sm:$0xff] %v1562_v18  ;;  %759 = vst [vmem:[%s1493_s13 + $0xb0] sm:$0xff] %v1564_v19  ;;  %v1595_v27 = vld [vmem:[#allocation2 + $0x28] sm:$0xff] }
 0x108   : > { %760 = vst [vmem:[%s1493_s13 + $0xb8] sm:$0xff] %v1566_v20  ;;  %v1597_v28 = vld [vmem:[#allocation2 + $0xa0] sm:$0xff]  ;;  %v1599_v29 = vld [vmem:[#allocation2 + $0xf8] sm:$0xff]  ;;  %761 = vst [vmem:[%s1493_s13 + $0xc0] sm:$0xff] %v1574_v22 }
 0x109   : > { %762 = vst [vmem:[%s1493_s13 + $0xc8] sm:$0xff] %v1576_v23  ;;  %763 = vst [vmem:[%s1493_s13 + $0xd0] sm:$0xff] %v1578_v24  ;;  %v1608_v31 = vld [vmem:[#allocation2 + $0x20] sm:$0xff]  ;;  %v1610_v32 = vld [vmem:[#allocation2 + $0x98] sm:$0xff] }
 0x10a   : > { %764 = vst [vmem:[%s1493_s13 + $0xd8] sm:$0xff] %v1595_v27  ;;  %765 = vst [vmem:[%s1493_s13 + $0xe0] sm:$0xff] %v1597_v28 }
 0x10b   : > { %766 = vst [vmem:[%s1493_s13 + $0xe8] sm:$0xff] %v1599_v29  ;;  %767 = vst [vmem:[%s1493_s13 + $0xf0] sm:$0xff] %v1608_v31 }
 0x10c   : > { %768 = vst [vmem:[%s1493_s13 + $0xf8] sm:$0xff] %v1610_v32 }
 0x10d   : > { %1236 = shalt.err (!%p1233_p7)
}
 0x10e   : > { %s1237_s30 = scalar_lea.hbm %s1591_s24, 4096  ;;  %s1241_s11 = scalar_lea.hbm %s1767_s2, 8192 }
 0x10f   : > { %p1238_p9 = scmp.ne.s32.totalorder %s1591_s24, %s1237_s30  ;;  %p1242_p12 = scmp.lt.s32.totalorder %s1591_s24, %s1767_s2 }
 0x110   : > { %p1243_p13 = scmp.lt.s32.totalorder %s1241_s11, %s1237_s30 }
 0x111   : > { %p1239_p10 = pnand %p1238_p9, %p1430_p4 }
 0x112   : > { %p1244_p0 = por %p1243_p13, %p1242_p12 }
 0x113   : > { %p1240_p11 = pneg %p1239_p10 }
 0x115   : > { %p1245_p1 = pnand %p1244_p0, %p1240_p11 }
 0x117   : > { %1248 = shalt.err (!%p1245_p1)
}
 0x118   : > { %s1355_s14 = smov 128   ;;  %s1356_s18 = smov 8   ;;  %v776_v38 = vadd.f32 %v775_v35, %v1504_v61  ;;  %v818_v39 = vmul.f32 %v1506_v62, %v1506_v62  ;;  %v847_v40 = vadd.f32 %v846_v37, %v816_v33  ;;  %v819_v42 = vmul.f32 %v1512_v0, %v1512_v0 }
 0x119   : > { %1134 = dma.vmem_to_hbm [thread:$0]  (%p1430_p4), %s1593_s21, 4096, %s1591_s24, %s1629_s27, %s1355_s14, %s1355_s14, %s1356_s18   ;;  %v820_v45 = vmul.f32 %v1514_v1, %v1514_v1  ;;  %v821_v48 = vmul.f32 %v1516_v2, %v1516_v2  ;;  %v822_v51 = vmul.f32 %v1524_v4, %v1524_v4  ;;  %v823_v54 = vmul.f32 %v1526_v5, %v1526_v5 }
 0x11a   : > { %v777_v41 = vadd.f32 %v776_v38, %v1506_v62  ;;  %v848_v43 = vadd.f32 %v847_v40, %v817_v36  ;;  %v824_v57 = vmul.f32 %v1528_v6, %v1528_v6  ;;  %v825_v60 = vmul.f32 %v1536_v9, %v1536_v9  ;;  %s1357_s26 = smov [#allocation5]   ;;  %s1358_s22 = smov [#allocation7]  }
 0x11b   : > { %v826_v63 = vmul.f32 %v1538_v10, %v1538_v10  ;;  %v829_v8 = vmul.f32 %v1552_v14, %v1552_v14  ;;  %s909_s21 = sshll.u32 %s1357_s26, 4  ;;  %s920_s24 = sshll.u32 %s1358_s22, 4  ;;  %s910_s21 = int_to_ptr.vmem [resolvable:$true] %s909_s21  ;;  %s921_s24 = int_to_ptr.vmem [resolvable:$true] %s920_s24 }
 0x11c   : > { %v778_v44 = vadd.f32 %v777_v41, %v1512_v0  ;;  %v849_v46 = vadd.f32 %v848_v43, %v818_v39  ;;  %s1249_s27 = scalar_lea.vmem %s910_s21, 16  ;;  %s1255_s5 = scalar_lea.vmem %s910_s21, 32 }
 0x11d   : > { %p1250_p4 = scmp.ne.s32.totalorder %s910_s21, %s1249_s27  ;;  %p1256_p6 = scmp.lt.s32.totalorder %s910_s21, %s910_s21 }
 0x11e   : > { %v779_v47 = vadd.f32 %v778_v44, %v1514_v1  ;;  %v850_v49 = vadd.f32 %v849_v46, %v819_v42  ;;  %p1257_p7 = scmp.lt.s32.totalorder %s1255_s5, %s1249_s27 }
 0x11f   : > { %p1251_p3 = pnand %p1250_p4, %p1420_p2 }
 0x120   : > { %v780_v50 = vadd.f32 %v779_v47, %v1516_v2  ;;  %v851_v52 = vadd.f32 %v850_v49, %v820_v45  ;;  %v827_v2 = vmul.f32 %v1540_v11, %v1540_v11  ;;  %p1258_p9 = por %p1257_p7, %p1256_p6 }
 0x121   : > { %p1252_p5 = pneg %p1251_p3 }
 0x122   : > { %v781_v53 = vadd.f32 %v780_v50, %v1524_v4  ;;  %v852_v55 = vadd.f32 %v851_v52, %v821_v48 }
 0x123   : > { %p1259_p10 = pnand %p1258_p9, %p1252_p5 }
 0x124   : > { %v782_v56 = vadd.f32 %v781_v53, %v1526_v5  ;;  %v853_v58 = vadd.f32 %v852_v55, %v822_v51  ;;  %v828_v5 = vmul.f32 %v1550_v13, %v1550_v13 }
 0x126   : > { %v783_v59 = vadd.f32 %v782_v56, %v1528_v6  ;;  %v854_v61 = vadd.f32 %v853_v58, %v823_v54 }
 0x128   : > { %v784_v62 = vadd.f32 %v783_v59, %v1536_v9  ;;  %v855_v0 = vadd.f32 %v854_v61, %v824_v57  ;;  %v769_v59 = vld [vmem:[#allocation5] sm:$0x1] }
 0x12a   : > { %v785_v1 = vadd.f32 %v784_v62, %v1538_v10  ;;  %v856_v3 = vadd.f32 %v855_v0, %v825_v60  ;;  %v830_v10 = vmul.f32 %v1554_v15, %v1554_v15  ;;  %v809_v62 = vld [vmem:[#allocation7] sm:$0x1] }
 0x12c   : > { %v786_v4 = vadd.f32 %v785_v1, %v1540_v11  ;;  %v857_v6 = vadd.f32 %v856_v3, %v826_v63  ;;  %v831_v11 = vmul.f32 %v1562_v18, %v1562_v18 }
 0x12e   : > { %v787_v7 = vadd.f32 %v786_v4, %v1550_v13  ;;  %v858_v9 = vadd.f32 %v857_v6, %v827_v2  ;;  %v832_v13 = vmul.f32 %v1564_v19, %v1564_v19 }
 0x130   : > { %v788_v12 = vadd.f32 %v787_v7, %v1552_v14  ;;  %v859_v16 = vadd.f32 %v858_v9, %v828_v5  ;;  %v833_v14 = vmul.f32 %v1566_v20, %v1566_v20 }
 0x132   : > { %v789_v17 = vadd.f32 %v788_v12, %v1554_v15  ;;  %v860_v21 = vadd.f32 %v859_v16, %v829_v8  ;;  %v834_v15 = vmul.f32 %v1574_v22, %v1574_v22 }
 0x134   : > { %v790_v25 = vadd.f32 %v789_v17, %v1562_v18  ;;  %v861_v26 = vadd.f32 %v860_v21, %v830_v10  ;;  %v835_v18 = vmul.f32 %v1576_v23, %v1576_v23 }
 0x136   : > { %v791_v30 = vadd.f32 %v790_v25, %v1564_v19  ;;  %v862_v33 = vadd.f32 %v861_v26, %v831_v11  ;;  %v836_v19 = vmul.f32 %v1578_v24, %v1578_v24 }
 0x138   : > { %v792_v34 = vadd.f32 %v791_v30, %v1566_v20  ;;  %v863_v35 = vadd.f32 %v862_v33, %v832_v13  ;;  %v837_v20 = vmul.f32 %v1595_v27, %v1595_v27 }
 0x13a   : > { %v793_v36 = vadd.f32 %v792_v34, %v1574_v22  ;;  %v864_v37 = vadd.f32 %v863_v35, %v833_v14  ;;  %v838_v22 = vmul.f32 %v1597_v28, %v1597_v28 }
 0x13c   : > { %v794_v38 = vadd.f32 %v793_v36, %v1576_v23  ;;  %v865_v39 = vadd.f32 %v864_v37, %v834_v15  ;;  %v839_v23 = vmul.f32 %v1599_v29, %v1599_v29 }
 0x13e   : > { %v795_v40 = vadd.f32 %v794_v38, %v1578_v24  ;;  %v866_v41 = vadd.f32 %v865_v39, %v835_v18  ;;  %v840_v24 = vmul.f32 %v1608_v31, %v1608_v31 }
 0x140   : > { %v796_v42 = vadd.f32 %v795_v40, %v1595_v27  ;;  %v867_v43 = vadd.f32 %v866_v41, %v836_v19  ;;  %v841_v27 = vmul.f32 %v1610_v32, %v1610_v32 }
 0x142   : > { %v797_v44 = vadd.f32 %v796_v42, %v1597_v28  ;;  %v868_v45 = vadd.f32 %v867_v43, %v837_v20 }
 0x144   : > { %v798_v46 = vadd.f32 %v797_v44, %v1599_v29  ;;  %v869_v47 = vadd.f32 %v868_v45, %v838_v22 }
 0x146   : > { %v799_v48 = vadd.f32 %v798_v46, %v1608_v31  ;;  %v870_v49 = vadd.f32 %v869_v47, %v839_v23 }
 0x148   : > { %v800_v50 = vadd.f32 %v799_v48, %v1610_v32  ;;  %v871_v51 = vadd.f32 %v870_v49, %v840_v24 }
 0x14a   : > { %v801_v28 = vrot.slane %v800_v50, 4  ;;  %v872_v52 = vadd.f32 %v871_v51, %v841_v27 }
 0x14c   : > { %v802_v53 = vadd.f32 %v801_v28, %v800_v50  ;;  %v873_v54 = vrot.slane %v872_v52, 4 }
 0x14e   : > { %v803_v55 = vrot.slane %v802_v53, 2  ;;  %v874_v56 = vadd.f32 %v873_v54, %v872_v52 }
 0x150   : > { %v804_v29 = vadd.f32 %v803_v55, %v802_v53  ;;  %v875_v57 = vrot.slane %v874_v56, 2 }
 0x152   : > { %v805_v58 = vrot.slane %v804_v29, 1  ;;  %v876_v60 = vadd.f32 %v875_v57, %v874_v56 }
 0x154   : > { %v806_v31 = vadd.f32 %v805_v58, %v804_v29  ;;  %v877_v61 = vrot.slane %v876_v60, 1 }
 0x156   : > { %v807_v32 = vadd.f32 %v806_v31, %v769_v59  ;;  %v878_v63 = vadd.f32 %v877_v61, %v876_v60 }
 0x158   : > { %808 = vst [vmem:[#allocation5] sm:$0x1] %v807_v32  ;;  %v879_v0 = vadd.f32 %v878_v63, %v809_v62 }
 0x159   : > { %1262 = shalt.err (!%p1259_p10)
}
 0x15a   : > { %1136 = dma.vmem_to_hbm [thread:$0]  (%p1420_p2), %s910_s21, 16, %s1768_s3, [#allocation6]   ;;  %880 = vst [vmem:[#allocation7] sm:$0x1] %v879_v0 }
 0x15b   : > { %s1273_s8 = scalar_lea.vmem %s921_s24, 16  ;;  %s1279_s30 = scalar_lea.vmem %s921_s24, 32 }
 0x15c   : > { %p1274_p11 = scmp.ne.s32.totalorder %s921_s24, %s1273_s8  ;;  %p1280_p0 = scmp.lt.s32.totalorder %s921_s24, %s921_s24 }
 0x15d   : > { %p1281_p1 = scmp.lt.s32.totalorder %s1279_s30, %s1273_s8 }
 0x15e   : > { %p1275_p12 = pnand %p1274_p11, %p1420_p2 }
 0x15f   : > { %p1282_p4 = por %p1281_p1, %p1280_p0 }
 0x160   : > { %p1276_p13 = pneg %p1275_p12 }
 0x162   : > { %p1283_p3 = pnand %p1282_p4, %p1276_p13 }
 0x164   : > { %1286 = shalt.err (!%p1283_p3)
}
 0x165   : > { %1138 = dma.vmem_to_hbm [thread:$0]  (%p1420_p2), %s921_s24, 16, %s1769_s4, [#allocation6]  }
 0x166   : > { %1322 = dma.done.wait (%p1420_p2), [#allocation6], 32  }
 0x167   : > { %1324 = vsyncadd (%p1420_p2), [#allocation6], 4294967264 }
 0x168 PF: > { %p1152_p5 = scmp.ge.s32.totalorder %s1351_s20, 2  ;;  %s940_s11 = sand.u32 1, %s1331_s15  }
 0x169   : > { %s941_s12 = scalar_lea.sflag [#allocation4], %s940_s11 }
 0x16a   : > { %p1145_p6 = pnand %p1152_p5, %p1437_p8 }
 0x16c   : > { %p1146_p7 = pneg %p1145_p6 }
 0x16e   : > { %1326 = dma.done.wait (%p1146_p7), %s941_s12, 4096  }
 0x16f   : > { %1328 = vsyncadd (%p1146_p7), %s941_s12, 4294963200  ;;  %s19_s20 = sadd.s32 1, %s1351_s20   ;;  %s1773_s15 = smov %s1335_s16 }
 0x170   : > { %p16_p9 = scmp.ge.s32.totalorder %s19_s20, 4   ;;  %s1774_s16 = smov %s1339_s17 }
 0x171   : > { %s1775_s17 = smov %s1443_s29  ;;  %s1776_s18 = smov %s1347_s19 }
 0x172   : > { %s1777_s19 = smov %s1779_s23  ;;  %18 = sbr.rel (!%p16_p9) target bundleno = 5 (0x5), region = 94 }
 0x177   :  { %946 = vsyncpa [#allocation4], 1 }
 0x178   :  { %948 = vsyncpa [#allocation4 + $0x1], 1 }
 0x179   :  { %949 = vsyncpa [#allocation6], 1 }

</bundles_post_ra>
